<compile_context>
chip_gen: v7x
topology: tpu7x:2x2x1
jax: 0.10.0
libtpu: 0.0.40
codegen_flags: <defaults>
</compile_context>

<pallas_src>
import functools

import jax
import jax.numpy as jnp
from jax import lax
from jax.experimental import pallas as pl
from jax.experimental.pallas import tpu as pltpu


def _round_up(x, m):
    return ((x + m - 1) // m) * m


# ---------------------------------------------------------------------------
# Kernel body
# ---------------------------------------------------------------------------
def _actor_critic_kernel(x_ref, w1_ref, b1_ref, w23_ref, b23_ref, out_ref, *, a_size):
    # Hidden layer: cast x to the compute dtype in-register (avoids an extra
    # XLA cast pass over x in HBM), bf16 MXU matmul, f32 accumulate.
    x = x_ref[...].astype(w1_ref.dtype)
    h = jnp.dot(x, w1_ref[...], preferred_element_type=jnp.float32) + b1_ref[...]
    h = jnp.maximum(h, 0.01 * h)                      # leaky_relu (slope 0.01), 1 VPU op

    # Fused action+value head: one MXU matmul over the padded [hidden_pad, 128] weight.
    scores = (jnp.dot(h.astype(w23_ref.dtype), w23_ref[...],
                      preferred_element_type=jnp.float32) + b23_ref[...])

    # Column roles: [0, a_size) -> action scores, a_size -> value, rest -> padding.
    col = lax.broadcasted_iota(jnp.int32, scores.shape, 1)
    is_action = col < a_size

    # Numerically stable log_softmax restricted to the action columns.
    masked = jnp.where(is_action, scores, -jnp.inf)
    m = jnp.max(masked, axis=-1, keepdims=True)
    shifted = scores - m                              # reused for exp and for logp
    exp_shifted = jnp.where(is_action, jnp.exp(shifted), 0.0)
    lse = jnp.log(jnp.sum(exp_shifted, axis=-1, keepdims=True))
    logp = shifted - lse

    # Action cols get log-probs; the value column (and padding) pass through raw
    # scores, so out[:, a_size] == state value.  Single lane-dense store.
    out_ref[...] = jnp.where(is_action, logp, scores).astype(out_ref.dtype)


# ---------------------------------------------------------------------------
# One-time parameter preparation (hoisted off the per-step hot path)
# ---------------------------------------------------------------------------
def prepare_params(params, *, compute_dtype=jnp.bfloat16):
    """Fuse action+value heads, pad hidden / output lanes to 128, cast to bf16."""
    s_dim, hidden = params["w1"].shape
    a_size = params["w2"].shape[1]
    hidden_pad = _round_up(hidden, 128)
    pad_cols = _round_up(a_size + 1, 128)

    w1 = jnp.zeros((s_dim, hidden_pad), compute_dtype)
    w1 = w1.at[:, :hidden].set(params["w1"].astype(compute_dtype))
    b1 = jnp.zeros((1, hidden_pad), jnp.float32)
    b1 = b1.at[:, :hidden].set(params["b1"].astype(jnp.float32))

    w23 = jnp.zeros((hidden_pad, pad_cols), compute_dtype)
    w23 = w23.at[:hidden, :a_size].set(params["w2"].astype(compute_dtype))
    w23 = w23.at[:hidden, a_size:a_size + 1].set(params["w3"].astype(compute_dtype))
    b23 = jnp.zeros((1, pad_cols), jnp.float32)
    b23 = b23.at[:, :a_size].set(params["b2"].astype(jnp.float32))
    b23 = b23.at[:, a_size:a_size + 1].set(params["b3"].astype(jnp.float32))

    return dict(w1=w1, b1=b1, w23=w23, b23=b23,
                s_dim=s_dim, a_size=a_size,
                hidden_pad=hidden_pad, pad_cols=pad_cols)


# ---------------------------------------------------------------------------
# Forward
# ---------------------------------------------------------------------------
def actor_critic_forward_padded(state_input, prep, *, tile_b=1024, out_dtype=jnp.bfloat16):
    """Returns the raw (B, 128) slab: cols [0, a_size) = log-probs, col a_size =
    state value, rest = padding.  Consuming the slab directly downstream avoids
    any post-kernel slice pass over the output."""
    B, s_dim = state_input.shape
    assert s_dim == prep["s_dim"]
    a_size = prep["a_size"]
    hidden_pad = prep["hidden_pad"]
    pad_cols = prep["pad_cols"]
    w1, b1, w23, b23 = prep["w1"], prep["b1"], prep["w23"], prep["b23"]

    # ---- Batch tile selection: no explicit padding of x (Pallas masks the
    #      ragged last block; garbage rows are never written back). ----
    tb = min(tile_b, _round_up(B, 16))
    if B >= 256 and pl.cdiv(B, tb) < 2:
        # v7x has 2 TensorCores: a single mega-tile would leave one idle.
        tb = max(16, _round_up(pl.cdiv(B, 2), 16))
    if tb >= B:
        tb = B  # single full-batch block (block dim == array dim is always legal)

    grid = (pl.cdiv(B, tb),)
    kernel = functools.partial(_actor_critic_kernel, a_size=a_size)

    def _isz(dt):
        return jnp.dtype(dt).itemsize

    cost = pl.CostEstimate(
        flops=(2 * B * s_dim * hidden_pad
               + 2 * B * hidden_pad * pad_cols
               + 6 * B * pad_cols),
        transcendentals=B * (pad_cols + 1),
        bytes_accessed=(B * s_dim * _isz(state_input.dtype)
                        + w1.size * _isz(w1.dtype) + b1.size * _isz(b1.dtype)
                        + w23.size * _isz(w23.dtype) + b23.size * _isz(b23.dtype)
                        + B * pad_cols * _isz(out_dtype)),
    )

    # NOTE: for large hidden sizes the resident weight blocks could additionally
    # be single-buffered (pipeline_mode=pl.Buffered(1)) to halve their VMEM
    # footprint against v7x's 64 MiB; at these sizes default buffering is fine.
    out = pl.pallas_call(
        kernel,
        out_shape=jax.ShapeDtypeStruct((B, pad_cols), out_dtype),
        grid=grid,
        in_specs=[
            pl.BlockSpec((tb, s_dim), lambda i: (i, 0)),             # x: tiled over batch
            pl.BlockSpec((s_dim, hidden_pad), lambda i: (0, 0)),     # w1: VMEM-resident
            pl.BlockSpec((1, hidden_pad), lambda i: (0, 0)),         # b1: VMEM-resident
            pl.BlockSpec((hidden_pad, pad_cols), lambda i: (0, 0)),  # w23: VMEM-resident
            pl.BlockSpec((1, pad_cols), lambda i: (0, 0)),           # b23: VMEM-resident
        ],
        out_specs=pl.BlockSpec((tb, pad_cols), lambda i: (i, 0)),
        compiler_params=pltpu.CompilerParams(
            dimension_semantics=("parallel",),
        ),
        cost_estimate=cost,
    )(state_input, w1, b1, w23, b23)
    return out


def actor_critic_forward(state_input, prep, *, tile_b=1024, out_dtype=jnp.bfloat16):
    """PyTorch-parity API: returns (log_a_probs [B, a_size], state_values [B, 1])."""
    out = actor_critic_forward_padded(state_input, prep, tile_b=tile_b, out_dtype=out_dtype)
    a_size = prep["a_size"]
    return out[:, :a_size], out[:, a_size:a_size + 1]


# ---------------------------------------------------------------------------
# Init + pure-JAX reference
# ---------------------------------------------------------------------------
def init_params(key, s_dim, a_size, hidden):
    """nn.Linear-style U(-1/sqrt(fan_in), 1/sqrt(fan_in)) init.
    Weights stored as [in, out] (transposed vs. PyTorch) for x @ W layout."""
    ks = jax.random.split(key, 6)

    def lin(kw, kb, fan_in, fan_out):
        bound = 1.0 / jnp.sqrt(jnp.float32(fan_in))
        w = jax.random.uniform(kw, (fan_in, fan_out), jnp.float32, -bound, bound)
        b = jax.random.uniform(kb, (1, fan_out), jnp.float32, -bound, bound)
        return w, b

    w1, b1 = lin(ks[0], ks[1], s_dim, hidden)
    w2, b2 = lin(ks[2], ks[3], hidden, a_size)
    w3, b3 = lin(ks[4], ks[5], hidden, 1)
    return {"w1": w1, "b1": b1, "w2": w2, "b2": b2, "w3": w3, "b3": b3}


def _reference_forward(x, p):
    h = x @ p["w1"] + p["b1"]
    h = jnp.where(h > 0, h, 0.01 * h)
    scores = h @ p["w2"] + p["b2"]
    logp = jax.nn.log_softmax(scores, axis=-1)
    val = h @ p["w3"] + p["b3"]
    return logp, val


if __name__ == "__main__":
    key = jax.random.PRNGKey(0)
    k_x, k_p, k_x2 = jax.random.split(key, 3)

    B, S_DIM, A_SIZE, HIDDEN = 2, 16, 4, 32
    x = jax.random.normal(k_x, (B, S_DIM), jnp.float32)
    params = init_params(k_p, S_DIM, A_SIZE, HIDDEN)
    ref_logp, ref_value = _reference_forward(x, params)

    # 1) f32 compute + f32 output: tight check of kernel structure
    #    (head fusion, hidden padding, action-column masking, full-batch block).
    prep32 = prepare_params(params, compute_dtype=jnp.float32)
    logp32, value32 = actor_critic_forward(x, prep32, out_dtype=jnp.float32)
    jax.block_until_ready((logp32, value32))
    assert logp32.shape == (B, A_SIZE) and value32.shape == (B, 1)
    assert jnp.allclose(logp32, ref_logp, atol=1e-5, rtol=1e-5)
    assert jnp.allclose(value32, ref_value, atol=1e-5, rtol=1e-5)

    # 2) Default fast path: bf16 MXU + bf16 output slab (f32 accumulation inside).
    prep_bf = prepare_params(params)
    logp_bf, value_bf = actor_critic_forward(x, prep_bf)
    jax.block_until_ready((logp_bf, value_bf))
    assert jnp.allclose(logp_bf.astype(jnp.float32), ref_logp, atol=3e-2, rtol=3e-2)
    assert jnp.allclose(value_bf.astype(jnp.float32), ref_value, atol=3e-2, rtol=3e-2)

    # 3) Larger batch, default tile: >=2 parallel grid steps (v7x dual-TC
    #    heuristic) with a ragged last tile and no runtime padding of x.
    B2 = 300
    x2 = jax.random.normal(k_x2, (B2, S_DIM), jnp.float32)
    ref_logp2, ref_value2 = _reference_forward(x2, params)
    logp2, value2 = actor_critic_forward(x2, prep32, out_dtype=jnp.float32)
    jax.block_until_ready((logp2, value2))
    assert logp2.shape == (B2, A_SIZE) and value2.shape == (B2, 1)
    assert jnp.allclose(logp2, ref_logp2, atol=1e-5, rtol=1e-5)
    assert jnp.allclose(value2, ref_value2, atol=1e-5, rtol=1e-5)

    # 3b) Explicit small tile: 3 grid steps, last one partial (44 rows).
    logp3, value3 = actor_critic_forward(x2, prep32, tile_b=128, out_dtype=jnp.float32)
    jax.block_until_ready((logp3, value3))
    assert jnp.allclose(logp3, ref_logp2, atol=1e-5, rtol=1e-5)
    assert jnp.allclose(value3, ref_value2, atol=1e-5, rtol=1e-5)

    print("KERNEL_OK")
</pallas_src>

<mosaic_0001>
module attributes {stable_mosaic.version = 11 : i64} {
  func.func @_actor_critic_kernel(%arg0: i32, %arg1: memref<2x16xf32, #tpu.memory_space<vmem>>, %arg2: memref<16x128xf32, #tpu.memory_space<vmem>>, %arg3: memref<1x128xf32, #tpu.memory_space<vmem>>, %arg4: memref<128x128xf32, #tpu.memory_space<vmem>>, %arg5: memref<1x128xf32, #tpu.memory_space<vmem>>, %arg6: memref<2x128xf32, #tpu.memory_space<vmem>>) attributes {dimension_semantics = [#tpu.dimension_semantics<parallel>], iteration_bounds = array<i64: 1>, scalar_prefetch = 0 : i64, scratch_operands = 0 : i64, tpu.core_type = #tpu.core_type<tc>, window_params = [{transform_indices = @transform_0, window_bounds = array<i64: 2, 16>}, {pipeline_mode = #tpu.pipeline_mode<synchronous>, transform_indices = @transform_1, window_bounds = array<i64: 16, 128>}, {pipeline_mode = #tpu.pipeline_mode<synchronous>, transform_indices = @transform_2, window_bounds = array<i64: 1, 128>}, {pipeline_mode = #tpu.pipeline_mode<synchronous>, transform_indices = @transform_3, window_bounds = array<i64: 128, 128>}, {pipeline_mode = #tpu.pipeline_mode<synchronous>, transform_indices = @transform_4, window_bounds = array<i64: 1, 128>}, {transform_indices = @transform_5, window_bounds = array<i64: 2, 128>}]} {
    %c0 = arith.constant 0 : index
    %c0_0 = arith.constant 0 : index
    %0 = vector.load %arg1[%c0, %c0_0] : memref<2x16xf32, #tpu.memory_space<vmem>>, vector<2x16xf32>
    %c0_1 = arith.constant 0 : index
    %c0_2 = arith.constant 0 : index
    %1 = vector.load %arg2[%c0_1, %c0_2] : memref<16x128xf32, #tpu.memory_space<vmem>>, vector<16x128xf32>
    %cst = arith.constant dense<0.000000e+00> : vector<2x128xf32>
    %2 = tpu.matmul %0, %1, %cst {dimension_numbers = #tpu.dot_dimension_numbers<[1], [0], [0], [1], [0, 0, 1, 1], [], []>} : vector<2x16xf32>, vector<16x128xf32>, vector<2x128xf32> -> vector<2x128xf32>
    %c0_3 = arith.constant 0 : index
    %c0_4 = arith.constant 0 : index
    %3 = vector.load %arg3[%c0_3, %c0_4] : memref<1x128xf32, #tpu.memory_space<vmem>>, vector<1x128xf32>
    %4 = vector.broadcast %3 : vector<1x128xf32> to vector<2x128xf32>
    %5 = arith.addf %2, %4 : vector<2x128xf32>
    %cst_5 = arith.constant 0.00999999977 : f32
    %6 = vector.broadcast %cst_5 : f32 to vector<2x128xf32>
    %7 = arith.mulf %6, %5 : vector<2x128xf32>
    %8 = arith.maximumf %5, %7 : vector<2x128xf32>
    %c0_6 = arith.constant 0 : index
    %c0_7 = arith.constant 0 : index
    %9 = vector.load %arg4[%c0_6, %c0_7] : memref<128x128xf32, #tpu.memory_space<vmem>>, vector<128x128xf32>
    %cst_8 = arith.constant dense<0.000000e+00> : vector<2x128xf32>
    %10 = tpu.matmul %8, %9, %cst_8 {dimension_numbers = #tpu.dot_dimension_numbers<[1], [0], [0], [1], [0, 0, 1, 1], [], []>} : vector<2x128xf32>, vector<128x128xf32>, vector<2x128xf32> -> vector<2x128xf32>
    %c0_9 = arith.constant 0 : index
    %c0_10 = arith.constant 0 : index
    %11 = vector.load %arg5[%c0_9, %c0_10] : memref<1x128xf32, #tpu.memory_space<vmem>>, vector<1x128xf32>
    %12 = vector.broadcast %11 : vector<1x128xf32> to vector<2x128xf32>
    %13 = arith.addf %10, %12 : vector<2x128xf32>
    %14 = tpu.iota {dimensions = array<i32: 1>} : vector<2x128xi32>
    %c4_i32 = arith.constant 4 : i32
    %15 = vector.broadcast %c4_i32 : i32 to vector<2x128xi32>
    %16 = arith.cmpi slt, %14, %15 : vector<2x128xi32>
    %cst_11 = arith.constant 0xFF800000 : f32
    %17 = vector.broadcast %cst_11 : f32 to vector<2x128xf32>
    %18 = arith.select %16, %13, %17 : vector<2x128xi1>, vector<2x128xf32>
    %cst_12 = arith.constant dense<0xFF800000> : vector<2xf32>
    %19 = vector.multi_reduction <maximumf>, %18, %cst_12 [1] : vector<2x128xf32> to vector<2xf32>
    %20 = vector.shape_cast %19 : vector<2xf32> to vector<2x1xf32>
    %21 = vector.broadcast %20 : vector<2x1xf32> to vector<2x128xf32>
    %22 = arith.subf %13, %21 : vector<2x128xf32>
    %23 = math.exp %22 : vector<2x128xf32>
    %cst_13 = arith.constant 0.000000e+00 : f32
    %24 = vector.broadcast %cst_13 : f32 to vector<2x128xf32>
    %25 = arith.select %16, %23, %24 : vector<2x128xi1>, vector<2x128xf32>
    %cst_14 = arith.constant dense<0.000000e+00> : vector<2xf32>
    %26 = vector.multi_reduction <add>, %25, %cst_14 [1] : vector<2x128xf32> to vector<2xf32>
    %27 = vector.shape_cast %26 : vector<2xf32> to vector<2x1xf32>
    %28 = math.log %27 : vector<2x1xf32>
    %29 = vector.broadcast %28 : vector<2x1xf32> to vector<2x128xf32>
    %30 = arith.subf %22, %29 : vector<2x128xf32>
    %31 = arith.select %16, %30, %13 : vector<2x128xi1>, vector<2x128xf32>
    %c0_15 = arith.constant 0 : index
    %c0_16 = arith.constant 0 : index
    %32 = vector.load %arg6[%c0_15, %c0_16] : memref<2x128xf32, #tpu.memory_space<vmem>>, vector<2x128xf32>
    tpu.vector_store %arg6[%c0_15, %c0_16], %31 {strides = array<i32>} : memref<2x128xf32, #tpu.memory_space<vmem>>, vector<2x128xf32>,
    return
  }
  func.func @transform_0(%arg0: i32) -> (i32, i32) {
    %c0_i32 = arith.constant 0 : i32
    %c0_i32_0 = arith.constant 0 : i32
    return %arg0, %c0_i32 : i32, i32
  }
  func.func @transform_1(%arg0: i32) -> (i32, i32) {
    %c0_i32 = arith.constant 0 : i32
    %c0_i32_0 = arith.constant 0 : i32
    %c0_i32_1 = arith.constant 0 : i32
    return %c0_i32, %c0_i32_0 : i32, i32
  }
  func.func @transform_2(%arg0: i32) -> (i32, i32) {
    %c0_i32 = arith.constant 0 : i32
    %c0_i32_0 = arith.constant 0 : i32
    %c0_i32_1 = arith.constant 0 : i32
    return %c0_i32, %c0_i32_0 : i32, i32
  }
  func.func @transform_3(%arg0: i32) -> (i32, i32) {
    %c0_i32 = arith.constant 0 : i32
    %c0_i32_0 = arith.constant 0 : i32
    %c0_i32_1 = arith.constant 0 : i32
    return %c0_i32, %c0_i32_0 : i32, i32
  }
  func.func @transform_4(%arg0: i32) -> (i32, i32) {
    %c0_i32 = arith.constant 0 : i32
    %c0_i32_0 = arith.constant 0 : i32
    %c0_i32_1 = arith.constant 0 : i32
    return %c0_i32, %c0_i32_0 : i32, i32
  }
  func.func @transform_5(%arg0: i32) -> (i32, i32) {
    %c0_i32 = arith.constant 0 : i32
    %c0_i32_0 = arith.constant 0 : i32
    return %arg0, %c0_i32 : i32, i32
  }
}

</mosaic_0001>

<bundles_post_ra>
// kernel: tpu_custom_call.1
= control target key start
LH: loop header
LB: loop body
LE: loop exit
PB: predicated region body
PF: predicated region fallthrough
CT: control target
= control target key end

     0   :  { %10 = vsyncpa [#allocation3], 0  ;;  %s576_s0 = inlined_call_operand.hbm [shape: f32[2,16], index: 0, kind: input, shape index: {}]   ;;  %s577_s1 = inlined_call_operand.hbm [shape: f32[16,128], index: 1, kind: input, shape index: {}]   ;;  %s578_s2 = inlined_call_operand.vmem [shape: f32[1,128], index: 2, kind: input, shape index: {}]   ;;  %s579_s3 = inlined_call_operand.hbm [shape: f32[128,128], index: 3, kind: input, shape index: {}]   ;;  %s580_s4 = inlined_call_operand.vmem [shape: f32[1,128], index: 4, kind: input, shape index: {}]   ;;  %s581_s5 = inlined_call_operand.hbm [shape: f32[2,128], index: 5, kind: output, shape index: {}]  }
   0x1   :  { %11 = vsyncpa [#allocation6], 0 }
   0x2   :  { %12 = vsyncpa [#allocation4], 0  ;;  %s474_s18 = smov [#allocation5]   ;;  %s380_s22 = scalar_lea.hbm %s577_s1, 256 }
   0x3   :  { %s28_s19 = sshll.u32 %s474_s18, 4  ;;  %p381_p0 = scmp.ne.s32.totalorder %s577_s1, %s380_s22  ;;  %s29_s19 = int_to_ptr.vmem [resolvable:$true] %s28_s19 }
   0x4   :  { %p384_p1 = scmp.lt.u32.totalorder %s380_s22, %s577_s1 }
   0x6   :  { %p386_p2 = pnand %p384_p1, %p381_p0 }
   0x8   :  { %389 = shalt.err (!%p386_p2)
}
   0x9   :  { %s390_s27 = scalar_lea.vmem %s29_s19, 256  ;;  %p395_p4 = scmp.lt.s32.totalorder %s29_s19, %s29_s19 }
   0xa   :  { %p391_p3 = scmp.ne.s32.totalorder %s29_s19, %s390_s27  ;;  %p396_p5 = scmp.lt.s32.totalorder %s390_s27, %s390_s27 }
   0xc   :  { %p397_p6 = por %p396_p5, %p395_p4 }
   0xe   :  { %p398_p7 = pnand %p397_p6, %p391_p3 }
  0x10   :  { %401 = shalt.err (!%p398_p7)
}
  0x11   :  { %s475_s28 = smov 128   ;;  %s476_s29 = smov 8  }
  0x12   :  { %34 = dma.hbm_to_vmem [thread:$0]  %s577_s1, 256, %s29_s19, [#allocation6], %s475_s28, %s475_s28, %s476_s29  }
  0x13   :  { %s477_s7 = smov [#allocation2]   ;;  %s478_s9 = smov [#allocation7]  }
  0x14   :  { %s19_s8 = sshll.u32 %s477_s7, 4  ;;  %s42_s10 = sshll.u32 %s478_s9, 4  ;;  %s20_s8 = int_to_ptr.vmem [resolvable:$true] %s19_s8  ;;  %s43_s10 = int_to_ptr.vmem [resolvable:$true] %s42_s10 }
  0x15   :  { %s402_s13 = scalar_lea.hbm %s576_s0, 32 }
  0x16   :  { %p403_p8 = scmp.ne.s32.totalorder %s576_s0, %s402_s13  ;;  %p406_p9 = scmp.lt.u32.totalorder %s402_s13, %s576_s0 }
  0x18   :  { %p408_p10 = pnand %p406_p9, %p403_p8 }
  0x1a   :  { %411 = shalt.err (!%p408_p10)
}
  0x1b   :  { %s412_s1 = scalar_lea.vmem %s20_s8, 32  ;;  %p417_p12 = scmp.lt.s32.totalorder %s20_s8, %s20_s8 }
  0x1c   :  { %p413_p11 = scmp.ne.s32.totalorder %s20_s8, %s412_s1  ;;  %p418_p13 = scmp.lt.s32.totalorder %s412_s1, %s412_s1 }
  0x1e   :  { %p419_p0 = por %p418_p13, %p417_p12 }
  0x20   :  { %p420_p1 = pnand %p419_p0, %p413_p11 }
  0x22   :  { %423 = shalt.err (!%p420_p1)
}
  0x23   :  { %22 = dma.hbm_to_vmem [thread:$0]  %s576_s0, 32, %s20_s8, [#allocation3]  }
  0x24   :  { %s424_s22 = scalar_lea.hbm %s579_s3, 2048 }
  0x25   :  { %p425_p2 = scmp.ne.s32.totalorder %s579_s3, %s424_s22  ;;  %p428_p3 = scmp.lt.u32.totalorder %s424_s22, %s579_s3 }
  0x27   :  { %p430_p4 = pnand %p428_p3, %p425_p2 }
  0x29   :  { %433 = shalt.err (!%p430_p4)
}
  0x2a   :  { %s434_s27 = scalar_lea.vmem %s43_s10, 2048  ;;  %p439_p6 = scmp.lt.s32.totalorder %s43_s10, %s43_s10 }
  0x2b   :  { %p435_p5 = scmp.ne.s32.totalorder %s43_s10, %s434_s27  ;;  %p440_p7 = scmp.lt.s32.totalorder %s434_s27, %s434_s27 }
  0x2d   :  { %p441_p8 = por %p440_p7, %p439_p6 }
  0x2f   :  { %p442_p9 = pnand %p441_p8, %p435_p5 }
  0x31   :  { %445 = shalt.err (!%p442_p9)
}
  0x32   :  { %48 = dma.hbm_to_vmem [thread:$0]  %s579_s3, 2048, %s43_s10, [#allocation6], %s475_s28, %s475_s28, %s476_s29  }
  0x33   :  { %468 = dma.done.wait [#allocation3], 32  }
  0x34   :  { %469 = vsyncadd [#allocation3], 4294967264 }
  0x35   :  { %470 = dma.done.wait [#allocation6], 2304  }
  0x36   :  { %471 = vsyncadd [#allocation6], 4294964992  ;;  %v479_v0 = vmov 0.0|0.0   ;;  %vm480_vm0 = vmmov 0   ;;  %v481_v1 = vmov 0.0   ;;  %v61_v2 = vld [vmem:[#allocation5] sm:$0xff]  ;;  %v239_v36 = vlaneseq }
  0x37   :  { %340 = vmatprep.subr.bf16.mxu0 %v479_v0  ;;  %302 = vmatprep.mubr.msk.f32.mxu0 %vm480_vm0, %v481_v1  ;;  %v62_v3 = vld [vmem:[#allocation5 + $0x8] sm:$0xff]  ;;  %v146_v5 = vld [vmem:[#allocation7] sm:$0xff]  ;;  %v147_v6 = vld [vmem:[#allocation7 + $0x8] sm:$0xff]  ;;  %vm70_vm1 = vcmask 130048   ;;  %vm243_vm3 = vcmask 1041408  }
  0x38   :  { %343 = vmatprep.subr.bf16.mxu1 %v479_v0  ;;  %337 = vmatprep.mubr.msk.f32.mxu1 %vm480_vm0, %v481_v1  ;;  %v341_v4 = vpack.c.bf16 %v62_v3, %v61_v2  ;;  %v148_v7 = vld [vmem:[#allocation7 + $0x10] sm:$0xff]  ;;  %v344_v8 = vpack.c.bf16 %v147_v6, %v146_v5  ;;  %v149_v9 = vld [vmem:[#allocation7 + $0x18] sm:$0xff]  ;;  %v60_v10 = vld [vmem:[#allocation2] sm:$0x3]  ;;  %v240_v37 = vand.u32 127, %v239_v36 }
  0x39   :  { %v347_v11 = vpack.c.bf16 %v149_v9, %v148_v7  ;;  %v150_v12 = vld [vmem:[#allocation7 + $0x20] sm:$0xff]  ;;  %v151_v13 = vld [vmem:[#allocation7 + $0x28] sm:$0xff]  ;;  %v152_v15 = vld [vmem:[#allocation7 + $0x30] sm:$0xff] }
  0x3a   :  { %342 = vmatpush3.bf16.msra.mxu0 %v341_v4  ;;  %345 = vmatpush3.bf16.msra.mxu1 %v344_v8  ;;  %v350_v14 = vpack.c.bf16 %v151_v13, %v150_v12  ;;  %v153_v16 = vld [vmem:[#allocation7 + $0x38] sm:$0xff]  ;;  %v154_v18 = vld [vmem:[#allocation7 + $0x40] sm:$0xff]  ;;  %v155_v19 = vld [vmem:[#allocation7 + $0x48] sm:$0xff]  ;;  %vm241_vm2 = vcmp.lt.s32.totalorder %v240_v37, 4 }
  0x3b   :  { %346 = vmatprep.subr.bf16.mxu1 %v479_v0  ;;  %v353_v17 = vpack.c.bf16 %v153_v16, %v152_v15  ;;  %v356_v20 = vpack.c.bf16 %v155_v19, %v154_v18  ;;  %v156_v21 = vld [vmem:[#allocation7 + $0x50] sm:$0xff]  ;;  %v157_v22 = vld [vmem:[#allocation7 + $0x58] sm:$0xff]  ;;  %v158_v24 = vld [vmem:[#allocation7 + $0x60] sm:$0xff] }
  0x3c   :  { %v359_v23 = vpack.c.bf16 %v157_v22, %v156_v21  ;;  %v159_v25 = vld [vmem:[#allocation7 + $0x68] sm:$0xff]  ;;  %v160_v27 = vld [vmem:[#allocation7 + $0x70] sm:$0xff]  ;;  %v161_v28 = vld [vmem:[#allocation7 + $0x78] sm:$0xff] }
  0x3d   :  { %303 = vmatmul.mubr.msk.f32.vlgmr.msra.gmra.mrb[0].mxu0 %vm70_vm1, %v60_v10  ;;  %v362_v26 = vpack.c.bf16 %v159_v25, %v158_v24  ;;  %v365_v29 = vpack.c.bf16 %v161_v28, %v160_v27  ;;  %v275_v30 = vld [vmem:[%s578_s2] ss:$0 sm:$0xff]  ;;  %s482_s2 = smov [#allocation8]  }
  0x3e   :  { %348 = vmatpush3.bf16.msra.mxu1 %v347_v11  ;;  %v277_v38 = vld [vmem:[%s580_s4] ss:$0 sm:$0xff]  ;;  %s265_s4 = sshll.u32 %s482_s2, 4  ;;  %s266_s4 = int_to_ptr.vmem [resolvable:$true] %s265_s4 }
  0x3f   :  { %349 = vmatprep.subr.bf16.mxu1 %v479_v0  ;;  %s446_s7 = scalar_lea.vmem %s266_s4, 32  ;;  %p451_p11 = scmp.lt.s32.totalorder %s266_s4, %s266_s4 }
  0x40   :  { %p447_p10 = scmp.ne.s32.totalorder %s266_s4, %s446_s7  ;;  %p452_p12 = scmp.lt.s32.totalorder %s446_s7, %s446_s7 }
  0x42   :  { %351 = vmatpush3.bf16.msra.mxu1 %v350_v14  ;;  %p453_p13 = por %p452_p12, %p451_p11 }
  0x43   :  { %352 = vmatprep.subr.bf16.mxu1 %v479_v0 }
  0x44   :  { %p454_p0 = pnand %p453_p13, %p447_p10 }
  0x46   :  { %354 = vmatpush3.bf16.msra.mxu1 %v353_v17 }
  0x47   :  { %355 = vmatprep.subr.bf16.mxu1 %v479_v0 }
  0x4a   :  { %357 = vmatpush3.bf16.msra.mxu1 %v356_v20 }
  0x4b   :  { %358 = vmatprep.subr.bf16.mxu1 %v479_v0 }
  0x4e   :  { %360 = vmatpush3.bf16.msra.mxu1 %v359_v23 }
  0x4f   :  { %361 = vmatprep.subr.bf16.mxu1 %v479_v0 }
  0x52   :  { %363 = vmatpush3.bf16.msra.mxu1 %v362_v26 }
  0x53   :  { %364 = vmatprep.subr.bf16.mxu1 %v479_v0 }
  0x56   :  { %366 = vmatpush3.bf16.msra.mxu1 %v365_v29 }
 0x110   :  { %v140_v31 = vpop.f32.mrb[0].mxu0 }
 0x111   :  { %v141_v32 = vadd.f32 %v275_v30, %v140_v31  ;;  %v304_v33 = vpop.f32.mrb[1].mxu0 }
 0x113   :  { %v144_v34 = vmul.f32 0.01, %v141_v32 }
 0x115   :  { %v145_v35 = vmax.f32 %v141_v32, %v144_v34 }
 0x117   :  { %338 = vmatmul.mubr.f32.vlgmr.msra.gmra.mrb[0].mxu1 %v145_v35 }
 0x1ea   :  { %v235_v39 = vpop.f32.mrb[0].mxu1 }
 0x1eb   :  { %v236_v40 = vadd.f32 %v277_v38, %v235_v39  ;;  %v339_v41 = vpop.f32.mrb[1].mxu1 }
 0x1ed   :  { %v242_v42 = vsel %vm241_vm2, %v236_v40, -inf }
 0x1ee   :  { %v244_v43 = vsel %vm243_vm3, %v242_v42, -inf }
 0x1ef   :  { %245 = vmax.xlane.f32.xlu0 %v244_v43 }
 0x27c   :  { %v246_v44 = vpop.xlane.xlu0 %245 }
 0x27d   :  { %v247_v45 = vsub.f32 %v236_v40, %v246_v44 }
 0x27f   :  { %v248_v46 = vmul.f32 1.442695, %v247_v45 }
 0x281   :  { %376 = vpow2.f32 %v248_v46 }
 0x28b   :  { %v377_v47 = vpop.eup %376 }
 0x28c   :  { %v250_v48 = vsel %vm241_vm2, %v377_v47, 0.0 }
 0x28d   :  { %v251_v49 = vsel %vm243_vm3, %v250_v48, 0.0 }
 0x28e   :  { %252 = vadd.xlane.f32.xlu0 %v251_v49 }
 0x31b   :  { %v253_v50 = vpop.xlane.xlu0 %252 }
 0x31c   :  { %378 = vlog2.f32 %v253_v50 }
 0x326   :  { %v379_v51 = vpop.eup %378 }
 0x327   :  { %v255_v52 = vmul.f32 0.6931472, %v379_v51 }
 0x329   :  { %v256_v53 = vsub.f32 %v247_v45, %v255_v52 }
 0x32b   :  { %v257_v54 = vsel %vm241_vm2, %v256_v53, %v236_v40 }
 0x32c   :  { %258 = vst [vmem:[#allocation8] sm:$0x3] %v257_v54 }
 0x32d   :  { %457 = shalt.err (!%p454_p0)
}
 0x32e   :  { %s458_s10 = scalar_lea.hbm %s581_s5, 32 }
 0x32f   :  { %p459_p1 = scmp.ne.s32.totalorder %s581_s5, %s458_s10  ;;  %p462_p2 = scmp.lt.u32.totalorder %s458_s10, %s581_s5 }
 0x331   :  { %p464_p3 = pnand %p462_p2, %p459_p1 }
 0x333   :  { %467 = shalt.err (!%p464_p3)
}
 0x334   :  { %268 = dma.vmem_to_hbm [thread:$0]  %s266_s4, 32, %s581_s5, [#allocation4]  }
 0x335   :  { %472 = dma.done.wait [#allocation4], 32  }
 0x336   :  { %473 = vsyncadd [#allocation4], 4294967264 }
 0x337   :  { %272 = vsyncpa [#allocation3], 1 }
 0x338   :  { %273 = vsyncpa [#allocation6], 1 }
 0x339   :  { %274 = vsyncpa [#allocation4], 1 }

</bundles_post_ra>
